<compile_context>
chip_gen: v7x
topology: tpu7x:2x2x1
jax: 0.10.0
libtpu: 0.0.40
codegen_flags: <defaults>
</compile_context>

<pallas_src>
import jax
import jax.numpy as jnp
from jax.experimental import pallas as pl
from jax.experimental.pallas import tpu as pltpu


WIDTHS = (3, 4, 5)  # module default


def _make_cnn_text_kernel(B, L, H, widths, Cp):
    """Build the fused CNN_Text kernel (all shape params are static Python ints)."""
    tap_offsets = []
    off = 0
    for w in widths:
        tap_offsets.append(off)
        off += w * Cp
    total_cols = off

    def kernel(x_ref, w_ref, b_ref, out_ref):
        # (B, L, H) -> (B*L, H); merge is (8,128)-tile aligned because L % 8 == 0.
        x2d = x_ref[...].reshape(B * L, H).astype(jnp.float32)

        # One big lane-dense MXU matmul for all widths / all taps (hoisted, fused).
        u = jnp.dot(x2d, w_ref[...], preferred_element_type=jnp.float32)  # (B*L, total)
        u3 = u.reshape(B, L, total_cols)

        for j, w in enumerate(widths):
            T = L - w + 1                      # valid conv output length for this width
            base = tap_offsets[j]
            # conv[b, t, c] = sum_k u3[b, t+k, base + k*Cp + c]
            acc = u3[:, 0:T, base:base + Cp]
            for k in range(1, w):
                acc = acc + u3[:, k:k + T, base + k * Cp: base + (k + 1) * Cp]
            acc = acc + b_ref[j:j + 1, :].reshape(1, 1, Cp)   # bias (broadcast over B, T)
            acc = jnp.maximum(acc, 0.0)                       # ReLU
            # global max-pool over time -> (B, Cp)
            out_ref[j] = jnp.max(acc, axis=1).astype(out_ref.dtype)

    return kernel


def cnn_text_pallas(x, weights, biases, widths=WIDTHS, filters=100):
    """x: (B, L, H) f32. weights[j]: (Co, w_j, H) (Ci=1 squeezed). biases[j]: (Co,)."""
    B, L, H = x.shape
    Co = filters
    Cp = max(128, ((Co + 127) // 128) * 128)   # lane-dense padded channel count
    nw = len(widths)

    # Repack conv kernels: column block (width j, tap k) holds W_j[:, k, :].T,
    # zero-padded from Co -> Cp lanes; padded lanes stay 0 and are sliced off later.
    cols = []
    for Wj in weights:
        w = Wj.shape[1]
        for k in range(w):
            wk = jnp.transpose(Wj[:, k, :]).astype(jnp.float32)          # (H, Co)
            cols.append(jnp.pad(wk, ((0, 0), (0, Cp - Co))))
    w_cat = jnp.concatenate(cols, axis=1)                                 # (H, sum(w)*Cp)
    b_pad = jnp.stack(
        [jnp.pad(bj.astype(jnp.float32), (0, Cp - Co)) for bj in biases]  # (nw, Cp)
    )
    total_cols = w_cat.shape[1]

    out = pl.pallas_call(
        _make_cnn_text_kernel(B, L, H, tuple(widths), Cp),
        out_shape=jax.ShapeDtypeStruct((nw, B, Cp), jnp.float32),
        grid=(1,),
        in_specs=[
            pl.BlockSpec((B, L, H), lambda i: (0, 0, 0)),        # x (VMEM resident)
            pl.BlockSpec((H, total_cols), lambda i: (0, 0)),     # packed weights
            pl.BlockSpec((nw, Cp), lambda i: (0, 0)),            # packed biases
        ],
        out_specs=pl.BlockSpec((nw, B, Cp), lambda i: (0, 0, 0)),
        compiler_params=pltpu.CompilerParams(dimension_semantics=("arbitrary",)),
    )(x.astype(jnp.float32), w_cat, b_pad)

    # (nw, B, Cp) -> strip lane padding -> torch.cat([...], dim=1) order: (B, nw*Co)
    return jnp.transpose(out[:, :, :Co], (1, 0, 2)).reshape(B, nw * Co)


def cnn_text_reference(x, weights, biases):
    """Pure-JAX reference matching the PyTorch module semantics."""
    B, L, H = x.shape
    outs = []
    for Wj, bj in zip(weights, biases):
        Co, w, _ = Wj.shape
        T = L - w + 1
        conv = jnp.stack(
            [jnp.einsum('bkh,ckh->bc', x[:, t:t + w, :], Wj) for t in range(T)],
            axis=1,
        ) + bj                                   # (B, T, Co)
        conv = jax.nn.relu(conv)
        outs.append(jnp.max(conv, axis=1))       # global max pool over time -> (B, Co)
    return jnp.concatenate(outs, axis=1)         # (B, nw*Co)


if __name__ == "__main__":
    B, L, H = 2, 16, 32        # batch=2, seq_len=16, n_in=32
    Co = 100                   # module default filters=100
    widths = WIDTHS

    key = jax.random.PRNGKey(0)
    keys = jax.random.split(key, 1 + 2 * len(widths))
    x = jax.random.normal(keys[0], (B, L, H), dtype=jnp.float32)

    weights, biases = [], []
    for j, w in enumerate(widths):
        kw, kb = keys[1 + 2 * j], keys[2 + 2 * j]
        weights.append(
            jax.random.normal(kw, (Co, w, H), dtype=jnp.float32) / jnp.sqrt(w * H)
        )
        biases.append(jax.random.normal(kb, (Co,), dtype=jnp.float32) * 0.1)

    out = jax.block_until_ready(cnn_text_pallas(x, weights, biases, widths, Co))
    assert out.shape == (B, len(widths) * Co), out.shape

    ref = cnn_text_reference(x, weights, biases)
    max_err = float(jnp.max(jnp.abs(out - ref)))
    assert jnp.allclose(out, ref, atol=2e-2, rtol=2e-2), max_err

    print("KERNEL_OK")
</pallas_src>

<mosaic_0001>
module attributes {stable_mosaic.version = 11 : i64} {
  func.func @kernel(%arg0: i32, %arg1: memref<2x16x32xf32, #tpu.memory_space<vmem>>, %arg2: memref<32x1536xf32, #tpu.memory_space<vmem>>, %arg3: memref<3x128xf32, #tpu.memory_space<vmem>>, %arg4: memref<3x2x128xf32, #tpu.memory_space<vmem>>) attributes {dimension_semantics = [#tpu.dimension_semantics<arbitrary>], iteration_bounds = array<i64: 1>, scalar_prefetch = 0 : i64, scratch_operands = 0 : i64, tpu.core_type = #tpu.core_type<tc>, window_params = [{pipeline_mode = #tpu.pipeline_mode<synchronous>, transform_indices = @transform_0, window_bounds = array<i64: 2, 16, 32>}, {pipeline_mode = #tpu.pipeline_mode<synchronous>, transform_indices = @transform_1, window_bounds = array<i64: 32, 1536>}, {pipeline_mode = #tpu.pipeline_mode<synchronous>, transform_indices = @transform_2, window_bounds = array<i64: 3, 128>}, {pipeline_mode = #tpu.pipeline_mode<synchronous>, transform_indices = @transform_3, window_bounds = array<i64: 3, 2, 128>}]} {
    %c0 = arith.constant 0 : index
    %c0_0 = arith.constant 0 : index
    %c0_1 = arith.constant 0 : index
    %0 = vector.load %arg1[%c0, %c0_0, %c0_1] : memref<2x16x32xf32, #tpu.memory_space<vmem>>, vector<2x16x32xf32>
    %1 = vector.shape_cast %0 : vector<2x16x32xf32> to vector<32x32xf32>
    %c0_2 = arith.constant 0 : index
    %c0_3 = arith.constant 0 : index
    %2 = vector.load %arg2[%c0_2, %c0_3] : memref<32x1536xf32, #tpu.memory_space<vmem>>, vector<32x1536xf32>
    %cst = arith.constant dense<0.000000e+00> : vector<32x1536xf32>
    %3 = tpu.matmul %1, %2, %cst {dimension_numbers = #tpu.dot_dimension_numbers<[1], [0], [0], [1], [0, 0, 1, 1], [], []>} : vector<32x32xf32>, vector<32x1536xf32>, vector<32x1536xf32> -> vector<32x1536xf32>
    %4 = vector.shape_cast %3 : vector<32x1536xf32> to vector<2x16x1536xf32>
    %5 = vector.extract_strided_slice %4 {offsets = [0, 0, 0], sizes = [2, 14, 128], strides = [1, 1, 1]} : vector<2x16x1536xf32> to vector<2x14x128xf32>
    %6 = vector.extract_strided_slice %4 {offsets = [0, 1, 128], sizes = [2, 14, 128], strides = [1, 1, 1]} : vector<2x16x1536xf32> to vector<2x14x128xf32>
    %7 = arith.addf %5, %6 : vector<2x14x128xf32>
    %8 = vector.extract_strided_slice %4 {offsets = [0, 2, 256], sizes = [2, 14, 128], strides = [1, 1, 1]} : vector<2x16x1536xf32> to vector<2x14x128xf32>
    %9 = arith.addf %7, %8 : vector<2x14x128xf32>
    %c0_4 = arith.constant 0 : index
    %c0_5 = arith.constant 0 : index
    %10 = vector.load %arg3[%c0_4, %c0_5] : memref<3x128xf32, #tpu.memory_space<vmem>>, vector<1x128xf32>
    %11 = vector.shape_cast %10 : vector<1x128xf32> to vector<1x1x128xf32>
    %12 = vector.broadcast %11 : vector<1x1x128xf32> to vector<2x14x128xf32>
    %13 = arith.addf %9, %12 : vector<2x14x128xf32>
    %cst_6 = arith.constant 0.000000e+00 : f32
    %14 = vector.broadcast %cst_6 : f32 to vector<2x14x128xf32>
    %15 = arith.maximumf %13, %14 : vector<2x14x128xf32>
    %cst_7 = arith.constant dense<0xFF800000> : vector<2x128xf32>
    %16 = vector.multi_reduction <maximumf>, %15, %cst_7 [1] : vector<2x14x128xf32> to vector<2x128xf32>
    %c0_8 = arith.constant 0 : index
    %c0_9 = arith.constant 0 : index
    %c0_10 = arith.constant 0 : index
    %17 = vector.load %arg4[%c0_8, %c0_9, %c0_10] : memref<3x2x128xf32, #tpu.memory_space<vmem>>, vector<1x2x128xf32>
    %18 = vector.shape_cast %17 : vector<1x2x128xf32> to vector<2x128xf32>
    %19 = vector.shape_cast %16 : vector<2x128xf32> to vector<1x2x128xf32>
    tpu.vector_store %arg4[%c0_8, %c0_9, %c0_10], %19 {strides = array<i32>} : memref<3x2x128xf32, #tpu.memory_space<vmem>>, vector<1x2x128xf32>,
    %20 = vector.extract_strided_slice %4 {offsets = [0, 0, 384], sizes = [2, 13, 128], strides = [1, 1, 1]} : vector<2x16x1536xf32> to vector<2x13x128xf32>
    %21 = vector.extract_strided_slice %4 {offsets = [0, 1, 512], sizes = [2, 13, 128], strides = [1, 1, 1]} : vector<2x16x1536xf32> to vector<2x13x128xf32>
    %22 = arith.addf %20, %21 : vector<2x13x128xf32>
    %23 = vector.extract_strided_slice %4 {offsets = [0, 2, 640], sizes = [2, 13, 128], strides = [1, 1, 1]} : vector<2x16x1536xf32> to vector<2x13x128xf32>
    %24 = arith.addf %22, %23 : vector<2x13x128xf32>
    %25 = vector.extract_strided_slice %4 {offsets = [0, 3, 768], sizes = [2, 13, 128], strides = [1, 1, 1]} : vector<2x16x1536xf32> to vector<2x13x128xf32>
    %26 = arith.addf %24, %25 : vector<2x13x128xf32>
    %c1 = arith.constant 1 : index
    %c0_11 = arith.constant 0 : index
    %27 = vector.load %arg3[%c1, %c0_11] : memref<3x128xf32, #tpu.memory_space<vmem>>, vector<1x128xf32>
    %28 = vector.shape_cast %27 : vector<1x128xf32> to vector<1x1x128xf32>
    %29 = vector.broadcast %28 : vector<1x1x128xf32> to vector<2x13x128xf32>
    %30 = arith.addf %26, %29 : vector<2x13x128xf32>
    %cst_12 = arith.constant 0.000000e+00 : f32
    %31 = vector.broadcast %cst_12 : f32 to vector<2x13x128xf32>
    %32 = arith.maximumf %30, %31 : vector<2x13x128xf32>
    %cst_13 = arith.constant dense<0xFF800000> : vector<2x128xf32>
    %33 = vector.multi_reduction <maximumf>, %32, %cst_13 [1] : vector<2x13x128xf32> to vector<2x128xf32>
    %c1_14 = arith.constant 1 : index
    %c0_15 = arith.constant 0 : index
    %c0_16 = arith.constant 0 : index
    %34 = vector.load %arg4[%c1_14, %c0_15, %c0_16] : memref<3x2x128xf32, #tpu.memory_space<vmem>>, vector<1x2x128xf32>
    %35 = vector.shape_cast %34 : vector<1x2x128xf32> to vector<2x128xf32>
    %36 = vector.shape_cast %33 : vector<2x128xf32> to vector<1x2x128xf32>
    tpu.vector_store %arg4[%c1_14, %c0_15, %c0_16], %36 {strides = array<i32>} : memref<3x2x128xf32, #tpu.memory_space<vmem>>, vector<1x2x128xf32>,
    %37 = vector.extract_strided_slice %4 {offsets = [0, 0, 896], sizes = [2, 12, 128], strides = [1, 1, 1]} : vector<2x16x1536xf32> to vector<2x12x128xf32>
    %38 = vector.extract_strided_slice %4 {offsets = [0, 1, 1024], sizes = [2, 12, 128], strides = [1, 1, 1]} : vector<2x16x1536xf32> to vector<2x12x128xf32>
    %39 = arith.addf %37, %38 : vector<2x12x128xf32>
    %40 = vector.extract_strided_slice %4 {offsets = [0, 2, 1152], sizes = [2, 12, 128], strides = [1, 1, 1]} : vector<2x16x1536xf32> to vector<2x12x128xf32>
    %41 = arith.addf %39, %40 : vector<2x12x128xf32>
    %42 = vector.extract_strided_slice %4 {offsets = [0, 3, 1280], sizes = [2, 12, 128], strides = [1, 1, 1]} : vector<2x16x1536xf32> to vector<2x12x128xf32>
    %43 = arith.addf %41, %42 : vector<2x12x128xf32>
    %44 = vector.extract_strided_slice %4 {offsets = [0, 4, 1408], sizes = [2, 12, 128], strides = [1, 1, 1]} : vector<2x16x1536xf32> to vector<2x12x128xf32>
    %45 = arith.addf %43, %44 : vector<2x12x128xf32>
    %c2 = arith.constant 2 : index
    %c0_17 = arith.constant 0 : index
    %46 = vector.load %arg3[%c2, %c0_17] : memref<3x128xf32, #tpu.memory_space<vmem>>, vector<1x128xf32>
    %47 = vector.shape_cast %46 : vector<1x128xf32> to vector<1x1x128xf32>
    %48 = vector.broadcast %47 : vector<1x1x128xf32> to vector<2x12x128xf32>
    %49 = arith.addf %45, %48 : vector<2x12x128xf32>
    %cst_18 = arith.constant 0.000000e+00 : f32
    %50 = vector.broadcast %cst_18 : f32 to vector<2x12x128xf32>
    %51 = arith.maximumf %49, %50 : vector<2x12x128xf32>
    %cst_19 = arith.constant dense<0xFF800000> : vector<2x128xf32>
    %52 = vector.multi_reduction <maximumf>, %51, %cst_19 [1] : vector<2x12x128xf32> to vector<2x128xf32>
    %c2_20 = arith.constant 2 : index
    %c0_21 = arith.constant 0 : index
    %c0_22 = arith.constant 0 : index
    %53 = vector.load %arg4[%c2_20, %c0_21, %c0_22] : memref<3x2x128xf32, #tpu.memory_space<vmem>>, vector<1x2x128xf32>
    %54 = vector.shape_cast %53 : vector<1x2x128xf32> to vector<2x128xf32>
    %55 = vector.shape_cast %52 : vector<2x128xf32> to vector<1x2x128xf32>
    tpu.vector_store %arg4[%c2_20, %c0_21, %c0_22], %55 {strides = array<i32>} : memref<3x2x128xf32, #tpu.memory_space<vmem>>, vector<1x2x128xf32>,
    return
  }
  func.func @transform_0(%arg0: i32) -> (i32, i32, i32) {
    %c0_i32 = arith.constant 0 : i32
    %c0_i32_0 = arith.constant 0 : i32
    %c0_i32_1 = arith.constant 0 : i32
    %c0_i32_2 = arith.constant 0 : i32
    return %c0_i32, %c0_i32_0, %c0_i32_1 : i32, i32, i32
  }
  func.func @transform_1(%arg0: i32) -> (i32, i32) {
    %c0_i32 = arith.constant 0 : i32
    %c0_i32_0 = arith.constant 0 : i32
    %c0_i32_1 = arith.constant 0 : i32
    return %c0_i32, %c0_i32_0 : i32, i32
  }
  func.func @transform_2(%arg0: i32) -> (i32, i32) {
    %c0_i32 = arith.constant 0 : i32
    %c0_i32_0 = arith.constant 0 : i32
    %c0_i32_1 = arith.constant 0 : i32
    return %c0_i32, %c0_i32_0 : i32, i32
  }
  func.func @transform_3(%arg0: i32) -> (i32, i32, i32) {
    %c0_i32 = arith.constant 0 : i32
    %c0_i32_0 = arith.constant 0 : i32
    %c0_i32_1 = arith.constant 0 : i32
    %c0_i32_2 = arith.constant 0 : i32
    return %c0_i32, %c0_i32_0, %c0_i32_1 : i32, i32, i32
  }
}

</mosaic_0001>

<bundles_post_ra>
// kernel: tpu_custom_call.1
= control target key start
LH: loop header
LB: loop body
LE: loop exit
PB: predicated region body
PF: predicated region fallthrough
CT: control target
= control target key end

     0   :  { %8 = vsyncpa [#allocation3], 0  ;;  %s1287_s0 = inlined_call_operand.hbm [shape: f32[2,16,32], index: 0, kind: input, shape index: {}]   ;;  %s1288_s1 = inlined_call_operand.hbm [shape: f32[32,1536], index: 1, kind: input, shape index: {}]   ;;  %s1289_s2 = inlined_call_operand.vmem [shape: f32[3,128], index: 2, kind: input, shape index: {}]   ;;  %s1290_s3 = inlined_call_operand.hbm [shape: f32[3,2,128], index: 3, kind: output, shape index: {}]  }
   0x1   :  { %9 = vsyncpa [#allocation6], 0 }
   0x2   :  { %10 = vsyncpa [#allocation4], 0  ;;  %s1088_s12 = smov [#allocation2]   ;;  %s1016_s16 = scalar_lea.hbm %s1287_s0, 512 }
   0x3   :  { %s16_s13 = sshll.u32 %s1088_s12, 4  ;;  %p1017_p0 = scmp.ne.s32.totalorder %s1287_s0, %s1016_s16  ;;  %s17_s13 = int_to_ptr.vmem [resolvable:$true] %s16_s13 }
   0x4   :  { %p1020_p1 = scmp.lt.u32.totalorder %s1016_s16, %s1287_s0 }
   0x6   :  { %p1022_p2 = pnand %p1020_p1, %p1017_p0 }
   0x8   :  { %1025 = shalt.err (!%p1022_p2)
}
   0x9   :  { %s1026_s21 = scalar_lea.vmem %s17_s13, 512  ;;  %p1031_p4 = scmp.lt.s32.totalorder %s17_s13, %s17_s13 }
   0xa   :  { %p1027_p3 = scmp.ne.s32.totalorder %s17_s13, %s1026_s21  ;;  %p1032_p5 = scmp.lt.s32.totalorder %s1026_s21, %s1026_s21 }
   0xc   :  { %p1033_p6 = por %p1032_p5, %p1031_p4 }
   0xe   :  { %p1034_p7 = pnand %p1033_p6, %p1027_p3 }
  0x10   :  { %1037 = shalt.err (!%p1034_p7)
}
  0x11   :  { %s1089_s22 = smov 128   ;;  %s1090_s23 = smov 8  }
  0x12   :  { %22 = dma.hbm_to_vmem [thread:$0]  %s1287_s0, 512, %s17_s13, [#allocation3], %s1089_s22, %s1089_s22, %s1090_s23  }
  0x13   :  { %s1091_s26 = smov [#allocation5]   ;;  %s1038_s30 = scalar_lea.hbm %s1288_s1, 6144 }
  0x14   :  { %s28_s27 = sshll.u32 %s1091_s26, 4  ;;  %p1039_p8 = scmp.ne.s32.totalorder %s1288_s1, %s1038_s30  ;;  %s29_s27 = int_to_ptr.vmem [resolvable:$true] %s28_s27 }
  0x15   :  { %p1042_p9 = scmp.lt.u32.totalorder %s1038_s30, %s1288_s1 }
  0x17   :  { %p1044_p10 = pnand %p1042_p9, %p1039_p8 }
  0x19   :  { %1047 = shalt.err (!%p1044_p10)
}
  0x1a   :  { %s1048_s8 = scalar_lea.vmem %s29_s27, 6144  ;;  %p1053_p12 = scmp.lt.s32.totalorder %s29_s27, %s29_s27 }
  0x1b   :  { %p1049_p11 = scmp.ne.s32.totalorder %s29_s27, %s1048_s8  ;;  %p1054_p13 = scmp.lt.s32.totalorder %s1048_s8, %s1048_s8 }
  0x1d   :  { %p1055_p0 = por %p1054_p13, %p1053_p12 }
  0x1f   :  { %p1056_p1 = pnand %p1055_p0, %p1049_p11 }
  0x21   :  { %1059 = shalt.err (!%p1056_p1)
}
  0x22   :  { %s1092_s0 = smov 1536   ;;  %s1093_s9 = smov 96  }
  0x23   :  { %34 = dma.hbm_to_vmem [thread:$0]  %s1288_s1, 6144, %s29_s27, [#allocation6], %s1092_s0, %s1092_s0, %s1093_s9  }
  0x24   :  { %1082 = dma.done.wait [#allocation3], 512  }
  0x25   :  { %1083 = vsyncadd [#allocation3], 4294966784 }
  0x26   :  { %1084 = dma.done.wait [#allocation6], 6144  }
  0x27   :  { %1085 = vsyncadd [#allocation6], 4294961152  ;;  %v1094_v0 = vmov 0.0   ;;  %v48_v1 = vld [vmem:[#allocation5 + $0x8] sm:$0xff]  ;;  %v50_v3 = vld [vmem:[#allocation5 + $0x18] sm:$0xff]  ;;  %vm95_vm0 = vcmask 261120  }
  0x28   :  { %172 = vmatprep.mubr.f32.mxu0 %v1094_v0  ;;  %261 = vmatprep.mubr.f32.mxu1 %v1094_v0  ;;  %v60_v2 = vld [vmem:[#allocation5 + $0x68] sm:$0xff]  ;;  %v62_v5 = vld [vmem:[#allocation5 + $0x78] sm:$0xff]  ;;  %v47_v6 = vld [vmem:[#allocation5] sm:$0xff]  ;;  %vm646_vm1 = vcmask 1046528   ;;  %vm665_vm2 = vcmask 1045504   ;;  %vm755_vm3 = vcmask 1044480  }
  0x29   :  { %v958_v4 = vpack.c.bf16 %v60_v2, %v48_v1  ;;  %v59_v7 = vld [vmem:[#allocation5 + $0x60] sm:$0xff]  ;;  %v966_v8 = vpack.c.bf16 %v62_v5, %v50_v3  ;;  %v49_v10 = vld [vmem:[#allocation5 + $0x10] sm:$0xff]  ;;  %v72_v12 = vld [vmem:[#allocation5 + $0xc8] sm:$0xff]  ;;  %vm863_vm4 = vcmask 1043456   ;;  %vm711_vm5 = vcmask 1041409  }
  0x2a   :  { %v960_v9 = vpack.c.bf16 %v59_v7, %v47_v6  ;;  %v61_v11 = vld [vmem:[#allocation5 + $0x70] sm:$0xff]  ;;  %v84_v14 = vld [vmem:[#allocation5 + $0x128] sm:$0xff]  ;;  %v74_v15 = vld [vmem:[#allocation5 + $0xd8] sm:$0xff] }
  0x2b   :  { %959 = vmatprep.subr.bf16.mxu0 %v958_v4  ;;  %v968_v13 = vpack.c.bf16 %v61_v11, %v49_v10  ;;  %v86_v16 = vld [vmem:[#allocation5 + $0x138] sm:$0xff]  ;;  %967 = vmatprep.subr.bf16.mxu1 %v966_v8  ;;  %v962_v17 = vpack.c.bf16 %v84_v14, %v72_v12  ;;  %v71_v19 = vld [vmem:[#allocation5 + $0xc0] sm:$0xff]  ;;  %v73_v21 = vld [vmem:[#allocation5 + $0xd0] sm:$0xff] }
  0x2c   :  { %961 = vmatpush1.bf16.msra.mxu0 %v960_v9  ;;  %v970_v18 = vpack.c.bf16 %v86_v16, %v74_v15  ;;  %v83_v20 = vld [vmem:[#allocation5 + $0x120] sm:$0xff]  ;;  %v85_v23 = vld [vmem:[#allocation5 + $0x130] sm:$0xff]  ;;  %v52_v24 = vld [vmem:[#allocation5 + $0x28] sm:$0xff] }
  0x2d   :  { %969 = vmatpush1.bf16.msra.mxu1 %v968_v13  ;;  %v964_v22 = vpack.c.bf16 %v83_v20, %v71_v19  ;;  %963 = vmatprep.subr.bf16.mxu0 %v962_v17  ;;  %v972_v25 = vpack.c.bf16 %v85_v23, %v73_v21  ;;  %v64_v26 = vld [vmem:[#allocation5 + $0x88] sm:$0xff]  ;;  %v51_v27 = vld [vmem:[#allocation5 + $0x20] sm:$0xff]  ;;  %v54_v30 = vld [vmem:[#allocation5 + $0x38] sm:$0xff] }
  0x2e   :  { %971 = vmatprep.subr.bf16.mxu1 %v970_v18  ;;  %v63_v28 = vld [vmem:[#allocation5 + $0x80] sm:$0xff]  ;;  %v974_v29 = vpack.c.bf16 %v64_v26, %v52_v24  ;;  %v66_v31 = vld [vmem:[#allocation5 + $0x98] sm:$0xff]  ;;  %v53_v35 = vld [vmem:[#allocation5 + $0x30] sm:$0xff] }
  0x2f   :  { %v1144_v32 = vld [vmem:[#allocation2] sm:$0xff]  ;;  %v976_v33 = vpack.c.bf16 %v63_v28, %v51_v27  ;;  %v982_v34 = vpack.c.bf16 %v66_v31, %v54_v30  ;;  %v65_v36 = vld [vmem:[#allocation5 + $0x90] sm:$0xff]  ;;  %v76_v37 = vld [vmem:[#allocation5 + $0xe8] sm:$0xff] }
  0x30   :  { %965 = vmatpush1.bf16.msra.mxu0 %v964_v22  ;;  %v88_v38 = vld [vmem:[#allocation5 + $0x148] sm:$0xff]  ;;  %v984_v39 = vpack.c.bf16 %v65_v36, %v53_v35  ;;  %v75_v41 = vld [vmem:[#allocation5 + $0xe0] sm:$0xff]  ;;  %v78_v43 = vld [vmem:[#allocation5 + $0xf8] sm:$0xff] }
  0x31   :  { %973 = vmatpush1.bf16.msra.mxu1 %v972_v25  ;;  %975 = vmatprep.subr.bf16.mxu0 %v974_v29  ;;  %v978_v40 = vpack.c.bf16 %v88_v38, %v76_v37  ;;  %v87_v42 = vld [vmem:[#allocation5 + $0x140] sm:$0xff]  ;;  %v90_v44 = vld [vmem:[#allocation5 + $0x158] sm:$0xff]  ;;  %v77_v45 = vld [vmem:[#allocation5 + $0xf0] sm:$0xff] }
  0x32   :  { %983 = vmatprep.subr.bf16.mxu1 %v982_v34  ;;  %v89_v46 = vld [vmem:[#allocation5 + $0x150] sm:$0xff]  ;;  %v1150_v47 = vld [vmem:[#allocation2 + $0x8] sm:$0xff]  ;;  %v986_v48 = vpack.c.bf16 %v90_v44, %v78_v43  ;;  %v980_v51 = vpack.c.bf16 %v87_v42, %v75_v41  ;;  %v58_v52 = vld [vmem:[#allocation5 + $0x58] sm:$0xff] }
  0x33   :  { %931 = vmatmul.mubr.msk.f32.vlgmr.msra.gmra.mrb[0].mxu0 %vm95_vm0, %v1144_v32  ;;  %v56_v49 = vld [vmem:[#allocation5 + $0x48] sm:$0xff]  ;;  %v70_v53 = vld [vmem:[#allocation5 + $0xb8] sm:$0xff]  ;;  %v988_v54 = vpack.c.bf16 %v89_v46, %v77_v45  ;;  %v1159_v57 = vld [vmem:[#allocation2 + $0x10] sm:$0xff] }
  0x34   :  { %935 = vmatmul.mubr.msk.f32.vlgmr.msra.gmra.mrb[0].mxu1 %vm95_vm0, %v1144_v32  ;;  %977 = vmatpush1.bf16.msra.mxu0 %v976_v33  ;;  %v68_v50 = vld [vmem:[#allocation5 + $0xa8] sm:$0xff]  ;;  %v998_v56 = vpack.c.bf16 %v70_v53, %v58_v52  ;;  %v46_v58 = vld [vmem:[#allocation2 + $0x18] sm:$0xff]  ;;  %v55_v59 = vld [vmem:[#allocation5 + $0x40] sm:$0xff] }
  0x35   :  { %178 = vmatprep.mubr.f32.mxu0 %v1094_v0  ;;  %267 = vmatprep.mubr.f32.mxu1 %v1094_v0  ;;  %v990_v55 = vpack.c.bf16 %v68_v50, %v56_v49  ;;  %v67_v60 = vld [vmem:[#allocation5 + $0xa0] sm:$0xff]  ;;  %v57_v61 = vld [vmem:[#allocation5 + $0x50] sm:$0xff]  ;;  %v80_v63 = vld [vmem:[#allocation5 + $0x108] sm:$0xff] }
  0x36   :  { %985 = vmatpush1.bf16.msra.mxu1 %v984_v39  ;;  %979 = vmatprep.subr.bf16.mxu0 %v978_v40  ;;  %v69_v62 = vld [vmem:[#allocation5 + $0xb0] sm:$0xff]  ;;  %v92_v1 = vld [vmem:[#allocation5 + $0x168] sm:$0xff]  ;;  %v992_v2 = vpack.c.bf16 %v67_v60, %v55_v59  ;;  %v82_v3 = vld [vmem:[#allocation5 + $0x118] sm:$0xff] }
  0x37   :  { %932 = vmatmul.mubr.msk.f32.gmra.mrb[2].mxu0 %vm95_vm0, %v1150_v47  ;;  %987 = vmatprep.subr.bf16.mxu1 %v986_v48  ;;  %v94_v4 = vld [vmem:[#allocation5 + $0x178] sm:$0xff]  ;;  %v1000_v5 = vpack.c.bf16 %v69_v62, %v57_v61  ;;  %v994_v6 = vpack.c.bf16 %v92_v1, %v80_v63  ;;  %v79_v7 = vld [vmem:[#allocation5 + $0x100] sm:$0xff]  ;;  %v81_v10 = vld [vmem:[#allocation5 + $0x110] sm:$0xff] }
  0x38   :  { %936 = vmatmul.mubr.msk.f32.gmra.mrb[2].mxu1 %vm95_vm0, %v1150_v47  ;;  %184 = vmatprep.mubr.f32.mxu0 %v1094_v0  ;;  %v91_v8 = vld [vmem:[#allocation5 + $0x160] sm:$0xff]  ;;  %v1002_v9 = vpack.c.bf16 %v94_v4, %v82_v3  ;;  %v93_v11 = vld [vmem:[#allocation5 + $0x170] sm:$0xff] }
  0x39   :  { %273 = vmatprep.mubr.f32.mxu1 %v1094_v0  ;;  %981 = vmatpush1.bf16.msra.mxu0 %v980_v51  ;;  %v996_v12 = vpack.c.bf16 %v91_v8, %v79_v7  ;;  %v1004_v13 = vpack.c.bf16 %v93_v11, %v81_v10  ;;  %v955_v30 = vld [vmem:[%s1289_s2] ss:$0 sm:$0xff] }
  0x3a   :  { %989 = vmatpush1.bf16.msra.mxu1 %v988_v54  ;;  %991 = vmatprep.subr.bf16.mxu0 %v990_v55 }
  0x3b   :  { %933 = vmatmul.mubr.msk.f32.gmra.mrb[4].mxu0 %vm95_vm0, %v1159_v57  ;;  %999 = vmatprep.subr.bf16.mxu1 %v998_v56 }
  0x3c   :  { %937 = vmatmul.mubr.msk.f32.gmra.mrb[4].mxu1 %vm95_vm0, %v1159_v57  ;;  %190 = vmatprep.mubr.f32.mxu0 %v1094_v0 }
  0x3d   :  { %279 = vmatprep.mubr.f32.mxu1 %v1094_v0 }
  0x3f   :  { %934 = vmatmul.mubr.msk.f32.gmra.mrb[6].mxu0 %vm95_vm0, %v46_v58 }
  0x40   :  { %938 = vmatmul.mubr.msk.f32.gmra.mrb[6].mxu1 %vm95_vm0, %v46_v58  ;;  %350 = vmatprep.mubr.f32.mxu0 %v1094_v0 }
  0x41   :  { %439 = vmatprep.mubr.f32.mxu1 %v1094_v0 }
  0x43   :  { %939 = vmatmul.mubr.msk.f32.vlgmr.msra.gmra.mrb[8].mxu0 %vm95_vm0, %v1144_v32 }
  0x44   :  { %943 = vmatmul.mubr.msk.f32.vlgmr.msra.gmra.mrb[8].mxu1 %vm95_vm0, %v1144_v32  ;;  %993 = vmatpush1.bf16.msra.mxu0 %v992_v2 }
  0x45   :  { %356 = vmatprep.mubr.f32.mxu0 %v1094_v0  ;;  %445 = vmatprep.mubr.f32.mxu1 %v1094_v0 }
  0x46   :  { %1001 = vmatpush1.bf16.msra.mxu1 %v1000_v5  ;;  %995 = vmatprep.subr.bf16.mxu0 %v994_v6 }
  0x47   :  { %940 = vmatmul.mubr.msk.f32.gmra.mrb[10].mxu0 %vm95_vm0, %v1150_v47  ;;  %1003 = vmatprep.subr.bf16.mxu1 %v1002_v9 }
  0x48   :  { %944 = vmatmul.mubr.msk.f32.gmra.mrb[10].mxu1 %vm95_vm0, %v1150_v47  ;;  %362 = vmatprep.mubr.f32.mxu0 %v1094_v0 }
  0x49   :  { %451 = vmatprep.mubr.f32.mxu1 %v1094_v0  ;;  %997 = vmatpush1.bf16.msra.mxu0 %v996_v12 }
  0x4a   :  { %1005 = vmatpush1.bf16.msra.mxu1 %v1004_v13 }
  0x4b   :  { %941 = vmatmul.mubr.msk.f32.gmra.mrb[12].mxu0 %vm95_vm0, %v1159_v57 }
  0x4c   :  { %945 = vmatmul.mubr.msk.f32.gmra.mrb[12].mxu1 %vm95_vm0, %v1159_v57  ;;  %368 = vmatprep.mubr.f32.mxu0 %v1094_v0 }
  0x4d   :  { %457 = vmatprep.mubr.f32.mxu1 %v1094_v0 }
  0x4f   :  { %942 = vmatmul.mubr.msk.f32.gmra.mrb[14].mxu0 %vm95_vm0, %v46_v58 }
  0x50   :  { %946 = vmatmul.mubr.msk.f32.gmra.mrb[14].mxu1 %vm95_vm0, %v46_v58  ;;  %528 = vmatprep.mubr.f32.mxu0 %v1094_v0 }
  0x51   :  { %617 = vmatprep.mubr.f32.mxu1 %v1094_v0 }
  0x53   :  { %947 = vmatmul.mubr.msk.f32.vlgmr.msra.gmra.mrb[16].mxu0 %vm95_vm0, %v1144_v32 }
  0x54   :  { %951 = vmatmul.mubr.msk.f32.vlgmr.msra.gmra.mrb[16].mxu1 %vm95_vm0, %v1144_v32  ;;  %534 = vmatprep.mubr.f32.mxu0 %v1094_v0 }
  0x55   :  { %623 = vmatprep.mubr.f32.mxu1 %v1094_v0 }
  0x57   :  { %948 = vmatmul.mubr.msk.f32.gmra.mrb[18].mxu0 %vm95_vm0, %v1150_v47 }
  0x58   :  { %952 = vmatmul.mubr.msk.f32.gmra.mrb[18].mxu1 %vm95_vm0, %v1150_v47  ;;  %540 = vmatprep.mubr.f32.mxu0 %v1094_v0 }
  0x59   :  { %629 = vmatprep.mubr.f32.mxu1 %v1094_v0 }
  0x5b   :  { %949 = vmatmul.mubr.msk.f32.gmra.mrb[20].mxu0 %vm95_vm0, %v1159_v57 }
  0x5c   :  { %953 = vmatmul.mubr.msk.f32.gmra.mrb[20].mxu1 %vm95_vm0, %v1159_v57  ;;  %546 = vmatprep.mubr.f32.mxu0 %v1094_v0 }
  0x5d   :  { %635 = vmatprep.mubr.f32.mxu1 %v1094_v0 }
  0x5f   :  { %950 = vmatmul.mubr.msk.f32.gmra.mrb[22].mxu0 %vm95_vm0, %v46_v58 }
  0x60   :  { %954 = vmatmul.mubr.msk.f32.gmra.mrb[22].mxu1 %vm95_vm0, %v46_v58 }
 0x106   :  { %v174_v14 = vpop.f32.mrb[0].mxu0 }
 0x107   :  { %v176_v15 = vpop.f32.mrb[1].mxu0  ;;  %v263_v16 = vpop.f32.mrb[0].mxu1 }
 0x108   :  { %v1214_v17 = vpop.f32.mrb[1].mxu1  ;;  %v666_v18 = vrot.slane %v263_v16, 2  ;;  %v647_v22 = vrot.slane %v176_v15, 1 }
 0x10a   :  { %v180_v19 = vpop.f32.mrb[2].mxu0 }
 0x10b   :  { %v182_v20 = vpop.f32.mrb[3].mxu0  ;;  %v269_v21 = vpop.f32.mrb[2].mxu1 }
 0x10c   :  { %v648_v23 = vrot.slane %v182_v20, 1  ;;  %v667_v24 = vrot.slane %v269_v21, 2  ;;  %v271_v25 = vpop.f32.mrb[3].mxu1 }
 0x10e   :  { %v649_v0 = vsel %vm646_vm1, %v647_v22, %v648_v23  ;;  %v658_v26 = vadd.f32 %v648_v23, %v180_v19  ;;  %v668_v27 = vsel %vm665_vm2, %v666_v18, %v667_v24  ;;  %v186_v28 = vpop.f32.mrb[4].mxu0 }
 0x10f   :  { %v657_v29 = vadd.f32 %v649_v0, %v174_v14  ;;  %v188_v31 = vpop.f32.mrb[5].mxu0  ;;  %v275_v32 = vpop.f32.mrb[4].mxu1 }
 0x110   :  { %v677_v33 = vadd.f32 %v667_v24, %v658_v26  ;;  %v1221_v34 = vpop.f32.mrb[5].mxu1  ;;  %v669_v37 = vrot.slane %v275_v32, 2  ;;  %v650_v43 = vrot.slane %v188_v31, 1 }
 0x111   :  { %v676_v35 = vadd.f32 %v668_v27, %v657_v29  ;;  %v956_v27 = vld [vmem:[%s1289_s2 + $0x1] ss:$0 sm:$0xff] }
 0x112   :  { %v686_v36 = vadd.f32 %v955_v30, %v677_v33  ;;  %v192_v38 = vpop.f32.mrb[6].mxu0 }
 0x113   :  { %v685_v39 = vadd.f32 %v955_v30, %v676_v35  ;;  %v194_v40 = vpop.f32.mrb[7].mxu0  ;;  %v281_v41 = vpop.f32.mrb[6].mxu1 }
 0x114   :  { %v690_v42 = vmax.f32 %v686_v36, 0.0  ;;  %v651_v44 = vrot.slane %v194_v40, 1  ;;  %v670_v45 = vrot.slane %v281_v41, 2  ;;  %v1223_v46 = vpop.f32.mrb[7].mxu1 }
 0x115   :  { %v689_v47 = vmax.f32 %v685_v39, 0.0 }
 0x116   :  { %v693_v48 = vsel %vm665_vm2, %v690_v42, -inf  ;;  %v652_v49 = vsel %vm646_vm1, %v650_v43, %v651_v44  ;;  %v660_v50 = vadd.f32 %v651_v44, %v192_v38  ;;  %v671_v51 = vsel %vm665_vm2, %v669_v37, %v670_v45  ;;  %v352_v52 = vpop.f32.mrb[8].mxu0 }
 0x117   :  { %v694_v53 = vmax.f32 %v689_v47, %v693_v48  ;;  %v659_v54 = vadd.f32 %v652_v49, %v186_v28  ;;  %v354_v55 = vpop.f32.mrb[9].mxu0  ;;  %v441_v56 = vpop.f32.mrb[8].mxu1  ;;  %v719_v3 = vrot.slane %v352_v52, 1 }
 0x118   :  { %v679_v57 = vadd.f32 %v670_v45, %v660_v50  ;;  %v1228_v58 = vpop.f32.mrb[9].mxu1  ;;  %v756_v62 = vrot.slane %v441_v56, 3  ;;  %v737_v8 = vrot.slane %v354_v55, 2 }
 0x119   :  { %v695_v59 = vrot.slane %v694_v53, 4  ;;  %v678_v60 = vadd.f32 %v671_v51, %v659_v54 }
 0x11a   :  { %v688_v61 = vadd.f32 %v955_v30, %v679_v57  ;;  %v358_v63 = vpop.f32.mrb[10].mxu0 }
 0x11b   :  { %v696_v1 = vmax.f32 %v694_v53, %v695_v59  ;;  %v687_v2 = vadd.f32 %v955_v30, %v678_v60  ;;  %v720_v4 = vrot.slane %v358_v63, 1  ;;  %v360_v5 = vpop.f32.mrb[11].mxu0  ;;  %v447_v6 = vpop.f32.mrb[10].mxu1 }
 0x11c   :  { %v692_v7 = vmax.f32 %v688_v61, 0.0  ;;  %v738_v9 = vrot.slane %v360_v5, 2  ;;  %v757_v10 = vrot.slane %v447_v6, 3  ;;  %v1230_v11 = vpop.f32.mrb[11].mxu1 }
 0x11d   :  { %v697_v12 = vrot.slane %v696_v1, 2  ;;  %v691_v13 = vmax.f32 %v687_v2, 0.0  ;;  %v721_v14 = vsel %vm646_vm1, %v719_v3, %v720_v4  ;;  %v730_v15 = vadd.f32 %v720_v4, %v271_v25 }
 0x11e   :  { %v701_v16 = vsel %vm665_vm2, %v692_v7, -inf  ;;  %v729_v18 = vadd.f32 %v721_v14, %v1214_v17  ;;  %v739_v19 = vsel %vm665_vm2, %v737_v8, %v738_v9  ;;  %v758_v20 = vsel %vm755_vm3, %v756_v62, %v757_v10  ;;  %v364_v21 = vpop.f32.mrb[12].mxu0 }
 0x11f   :  { %v702_v22 = vmax.f32 %v691_v13, %v701_v16  ;;  %v748_v23 = vadd.f32 %v738_v9, %v730_v15  ;;  %v366_v24 = vpop.f32.mrb[13].mxu0  ;;  %v453_v0 = vpop.f32.mrb[12].mxu1  ;;  %v1242_v30 = vmax.f32 %v696_v1, %v697_v12  ;;  %v722_v36 = vrot.slane %v364_v21, 1 }
 0x120   :  { %v747_v26 = vadd.f32 %v739_v19, %v729_v18  ;;  %v1240_v28 = vpop.f32.mrb[13].mxu1  ;;  %v759_v31 = vrot.slane %v453_v0, 3  ;;  %v740_v41 = vrot.slane %v366_v24, 2 }
 0x121   :  { %v703_v25 = vrot.slane %v702_v22, 4  ;;  %v767_v29 = vadd.f32 %v757_v10, %v748_v23 }
 0x122   :  { %v766_v17 = vadd.f32 %v758_v20, %v747_v26  ;;  %v370_v32 = vpop.f32.mrb[14].mxu0 }
 0x123   :  { %v704_v33 = vmax.f32 %v702_v22, %v703_v25  ;;  %v776_v35 = vadd.f32 %v956_v27, %v767_v29  ;;  %v723_v37 = vrot.slane %v370_v32, 1  ;;  %v372_v38 = vpop.f32.mrb[15].mxu0  ;;  %v459_v39 = vpop.f32.mrb[14].mxu1 }
 0x124   :  { %v775_v40 = vadd.f32 %v956_v27, %v766_v17  ;;  %v741_v42 = vrot.slane %v372_v38, 2  ;;  %v760_v43 = vrot.slane %v459_v39, 3  ;;  %v1244_v44 = vpop.f32.mrb[15].mxu1 }
 0x125   :  { %v705_v45 = vrot.slane %v704_v33, 2  ;;  %v780_v47 = vmax.f32 %v776_v35, 0.0  ;;  %v724_v48 = vsel %vm646_vm1, %v722_v36, %v723_v37  ;;  %v732_v49 = vadd.f32 %v723_v37, %v1223_v46 }
 0x126   :  { %v779_v50 = vmax.f32 %v775_v40, 0.0  ;;  %v731_v51 = vadd.f32 %v724_v48, %v1221_v34  ;;  %v742_v52 = vsel %vm665_vm2, %v740_v41, %v741_v42  ;;  %v761_v53 = vsel %vm755_vm3, %v759_v31, %v760_v43  ;;  %v530_v54 = vpop.f32.mrb[16].mxu0 }
 0x127   :  { %v706_v55 = vmax.f32 %v704_v33, %v705_v45  ;;  %v783_v56 = vsel %vm755_vm3, %v780_v47, -inf  ;;  %v750_v57 = vadd.f32 %v741_v42, %v732_v49  ;;  %v532_v59 = vpop.f32.mrb[17].mxu0  ;;  %v619_v60 = vpop.f32.mrb[16].mxu1  ;;  %v699_v46 = vrot.slane %v1242_v30, 1 }
 0x128   :  { %v784_v61 = vmax.f32 %v779_v50, %v783_v56  ;;  %v749_v62 = vadd.f32 %v742_v52, %v731_v51  ;;  %v621_v63 = vpop.f32.mrb[17].mxu1  ;;  %v809_v2 = vrot.slane %v530_v54, 1  ;;  %v827_v5 = vrot.slane %v532_v59, 2 }
 0x129   :  { %v707_v1 = vrot.slane %v706_v55, 1  ;;  %v769_v34 = vadd.f32 %v760_v43, %v750_v57  ;;  %v845_v6 = vrot.slane %v619_v60, 3  ;;  %v864_v10 = vrot.slane %v621_v63, 4  ;;  %v957_v43 = vld [vmem:[%s1289_s2 + $0x2] ss:$0 sm:$0xff]  ;;  %s1095_s2 = smov [#allocation7]  }
 0x12a   :  { %v785_v3 = vrot.slane %v784_v61, 4  ;;  %v768_v4 = vadd.f32 %v761_v53, %v749_v62  ;;  %v536_v7 = vpop.f32.mrb[18].mxu0  ;;  %v700_v37 = vmax.f32 %v1242_v30, %v699_v46  ;;  %s918_s17 = sshll.u32 %s1095_s2, 4  ;;  %s919_s17 = int_to_ptr.vmem [resolvable:$true] %s918_s17 }
 0x12b   :  { %v708_v8 = vmax.f32 %v706_v55, %v707_v1  ;;  %v778_v9 = vadd.f32 %v956_v27, %v769_v34  ;;  %v810_v12 = vrot.slane %v536_v7, 1  ;;  %v625_v13 = vpop.f32.mrb[18].mxu1  ;;  %v538_v14 = vpop.f32.mrb[19].mxu0  ;;  %s1060_s18 = scalar_lea.vmem %s919_s17, 96  ;;  %p1065_p3 = scmp.lt.s32.totalorder %s919_s17, %s919_s17 }
 0x12c   :  { %v786_v15 = vmax.f32 %v784_v61, %v785_v3  ;;  %v777_v16 = vadd.f32 %v956_v27, %v768_v4  ;;  %v846_v18 = vrot.slane %v625_v13, 3  ;;  %v828_v19 = vrot.slane %v538_v14, 2  ;;  %v627_v20 = vpop.f32.mrb[19].mxu1  ;;  %p1061_p2 = scmp.ne.s32.totalorder %s919_s17, %s1060_s18  ;;  %p1066_p4 = scmp.lt.s32.totalorder %s1060_s18, %s1060_s18 }
 0x12d   :  { %v782_v21 = vmax.f32 %v778_v9, 0.0  ;;  %v811_v22 = vsel %vm646_vm1, %v809_v2, %v810_v12  ;;  %v820_v23 = vadd.f32 %v810_v12, %v1230_v11  ;;  %v865_v24 = vrot.slane %v627_v20, 4 }
 0x12e   :  { %v787_v0 = vrot.slane %v786_v15, 2  ;;  %v781_v26 = vmax.f32 %v777_v16, 0.0  ;;  %v819_v25 = vadd.f32 %v811_v22, %v1228_v58  ;;  %v847_v29 = vsel %vm755_vm3, %v845_v6, %v846_v18  ;;  %v542_v17 = vpop.f32.mrb[20].mxu0  ;;  %p1067_p5 = por %p1066_p4, %p1065_p3 }
 0x12f   :  { %v791_v31 = vsel %vm755_vm3, %v782_v21, -inf  ;;  %v829_v27 = vsel %vm665_vm2, %v827_v5, %v828_v19  ;;  %v838_v32 = vadd.f32 %v828_v19, %v820_v23  ;;  %v866_v33 = vsel %vm863_vm4, %v864_v10, %v865_v24  ;;  %v544_v35 = vpop.f32.mrb[21].mxu0  ;;  %v631_v36 = vpop.f32.mrb[20].mxu1 }
 0x130   :  { %v792_v11 = vmax.f32 %v781_v26, %v791_v31  ;;  %v837_v38 = vadd.f32 %v829_v27, %v819_v25  ;;  %v633_v39 = vpop.f32.mrb[21].mxu1  ;;  %v788_v40 = vmax.f32 %v786_v15, %v787_v0  ;;  %v848_v45 = vrot.slane %v631_v36, 3  ;;  %p1068_p6 = pnand %p1067_p5, %p1061_p2 }
 0x131   :  { %v856_v41 = vadd.f32 %v846_v18, %v838_v32  ;;  %v712_v48 = vsel %vm711_vm5, %v708_v8, %v700_v37  ;;  %v812_v50 = vrot.slane %v542_v17, 1  ;;  %v830_v51 = vrot.slane %v544_v35, 2 }
 0x132   :  { %v793_v58 = vrot.slane %v792_v11, 4  ;;  %v855_v42 = vadd.f32 %v847_v29, %v837_v38  ;;  %v548_v47 = vpop.f32.mrb[22].mxu0  ;;  %714 = vst [vmem:[#allocation7] sm:$0x3] %v712_v48  ;;  %v867_v56 = vrot.slane %v633_v39, 4  ;;  %v789_v7 = vrot.slane %v788_v40, 1 }
 0x133   :  { %v875_v49 = vadd.f32 %v865_v24, %v856_v41  ;;  %v813_v52 = vrot.slane %v548_v47, 1  ;;  %v637_v30 = vpop.f32.mrb[22].mxu1  ;;  %v550_v53 = vpop.f32.mrb[23].mxu0 }
 0x134   :  { %v794_v54 = vmax.f32 %v792_v11, %v793_v58  ;;  %v874_v55 = vadd.f32 %v866_v33, %v855_v42  ;;  %v849_v57 = vrot.slane %v637_v30, 3  ;;  %v639_v59 = vpop.f32.mrb[23].mxu1  ;;  %v831_v63 = vrot.slane %v550_v53, 2 }
 0x135   :  { %v884_v60 = vadd.f32 %v957_v43, %v875_v49  ;;  %v814_v61 = vsel %vm646_vm1, %v812_v50, %v813_v52  ;;  %v822_v62 = vadd.f32 %v813_v52, %v1244_v44  ;;  %v868_v6 = vrot.slane %v639_v59, 4 }
 0x136   :  { %v795_v46 = vrot.slane %v794_v54, 2  ;;  %v883_v1 = vadd.f32 %v957_v43, %v874_v55  ;;  %v821_v34 = vadd.f32 %v814_v61, %v1240_v28  ;;  %v850_v2 = vsel %vm755_vm3, %v848_v45, %v849_v57 }
 0x137   :  { %v888_v3 = vmax.f32 %v884_v60, 0.0  ;;  %v832_v4 = vsel %vm665_vm2, %v830_v51, %v831_v63  ;;  %v840_v5 = vadd.f32 %v831_v63, %v822_v62  ;;  %v869_v44 = vsel %vm863_vm4, %v867_v56, %v868_v6 }
 0x138   :  { %v796_v8 = vmax.f32 %v794_v54, %v795_v46  ;;  %v887_v9 = vmax.f32 %v883_v1, 0.0  ;;  %v839_v10 = vadd.f32 %v832_v4, %v821_v34  ;;  %v790_v18 = vmax.f32 %v788_v40, %v789_v7 }
 0x139   :  { %v891_v12 = vsel %vm863_vm4, %v888_v3, -inf  ;;  %v858_v13 = vadd.f32 %v849_v57, %v840_v5 }
 0x13a   :  { %v797_v14 = vrot.slane %v796_v8, 1  ;;  %v892_v15 = vmax.f32 %v887_v9, %v891_v12  ;;  %v857_v16 = vadd.f32 %v850_v2, %v839_v10 }
 0x13b   :  { %v877_v28 = vadd.f32 %v868_v6, %v858_v13 }
 0x13c   :  { %v798_v19 = vmax.f32 %v796_v8, %v797_v14  ;;  %v893_v20 = vrot.slane %v892_v15, 4  ;;  %v876_v21 = vadd.f32 %v869_v44, %v857_v16 }
 0x13d   :  { %v886_v22 = vadd.f32 %v957_v43, %v877_v28 }
 0x13e   :  { %v894_v23 = vmax.f32 %v892_v15, %v893_v20  ;;  %v885_v24 = vadd.f32 %v957_v43, %v876_v21  ;;  %v801_v0 = vsel %vm711_vm5, %v798_v19, %v790_v18 }
 0x13f   :  { %v890_v26 = vmax.f32 %v886_v22, 0.0  ;;  %804 = vst [vmem:[#allocation7 + $0x2] sm:$0x3] %v801_v0 }
 0x140   :  { %v889_v25 = vmax.f32 %v885_v24, 0.0  ;;  %v895_v17 = vrot.slane %v894_v23, 2 }
 0x141   :  { %v899_v29 = vsel %vm863_vm4, %v890_v26, -inf }
 0x142   :  { %v900_v31 = vmax.f32 %v889_v25, %v899_v29  ;;  %v896_v32 = vmax.f32 %v894_v23, %v895_v17 }
 0x144   :  { %v901_v27 = vrot.slane %v900_v31, 4  ;;  %v897_v36 = vrot.slane %v896_v32, 1 }
 0x146   :  { %v902_v33 = vmax.f32 %v900_v31, %v901_v27  ;;  %v898_v38 = vmax.f32 %v896_v32, %v897_v36 }
 0x148   :  { %v903_v35 = vrot.slane %v902_v33, 2 }
 0x14a   :  { %v904_v37 = vmax.f32 %v902_v33, %v903_v35 }
 0x14c   :  { %v905_v11 = vrot.slane %v904_v37, 1 }
 0x14e   :  { %v906_v39 = vmax.f32 %v904_v37, %v905_v11 }
 0x150   :  { %v909_v40 = vsel %vm711_vm5, %v906_v39, %v898_v38 }
 0x151   :  { %912 = vst [vmem:[#allocation7 + $0x4] sm:$0x3] %v909_v40 }
 0x152   :  { %1071 = shalt.err (!%p1068_p6)
}
 0x153   :  { %s1072_s21 = scalar_lea.hbm %s1290_s3, 96 }
 0x154   :  { %p1073_p7 = scmp.ne.s32.totalorder %s1290_s3, %s1072_s21  ;;  %p1076_p8 = scmp.lt.u32.totalorder %s1072_s21, %s1290_s3 }
 0x156   :  { %p1078_p9 = pnand %p1076_p8, %p1073_p7 }
 0x158   :  { %1081 = shalt.err (!%p1078_p9)
}
 0x159   :  { %s1096_s26 = smov 32   ;;  %s1097_s27 = smov 2  }
 0x15a   :  { %924 = dma.vmem_to_hbm [thread:$0]  %s919_s17, 96, %s1290_s3, [#allocation4], %s1096_s26, %s1096_s26, %s1097_s27  }
 0x15b   :  { %1086 = dma.done.wait [#allocation4], 96  }
 0x15c   :  { %1087 = vsyncadd [#allocation4], 4294967200 }
 0x15d   :  { %928 = vsyncpa [#allocation3], 1 }
 0x15e   :  { %929 = vsyncpa [#allocation6], 1 }
 0x15f   :  { %930 = vsyncpa [#allocation4], 1 }

</bundles_post_ra>
